<compile_context>
chip_gen: v6e
topology: v6e:2x2x1
jax: 0.10.0
libtpu: 0.0.40
codegen_flags: <defaults>
</compile_context>

<pallas_src>
import math
from functools import partial

import jax
import jax.numpy as jnp
from jax.experimental import pallas as pl
from jax.experimental.pallas import tpu as pltpu


def _build_pe(d_model: int, max_len: int = 5000) -> jnp.ndarray:
    """Deterministic sinusoidal table, shape (max_len, d_model), float32."""
    position = jnp.arange(max_len, dtype=jnp.float32)[:, None]            # (L, 1)
    div_term = jnp.exp(
        jnp.arange(0, d_model, 2, dtype=jnp.float32)
        * (-math.log(10000.0) / d_model)
    )                                                                      # (ceil(D/2),)
    angles = position * div_term                                           # (L, ceil(D/2))
    pe = jnp.zeros((max_len, d_model), dtype=jnp.float32)
    pe = pe.at[:, 0::2].set(jnp.sin(angles))
    # Guard odd d_model (cos columns = floor(D/2)); identical to PyTorch for even D.
    pe = pe.at[:, 1::2].set(jnp.cos(angles[:, : d_model // 2]))
    return pe


def _pe_add_kernel(x_ref, pe_ref, o_ref, *, batch: int):
    # x_ref: (TS, B*D) in x dtype; pe_ref: (TS, D) fp32.
    x = x_ref[...].astype(jnp.float32)                 # fp32 math (matches PyTorch)
    pe = pe_ref[...]                                   # (TS, D) fp32
    if batch > 1:
        pe = jnp.tile(pe, (1, batch))                  # lane-axis replicate -> (TS, B*D)
    o_ref[...] = (x + pe).astype(o_ref.dtype)          # cast only at the store


def _choose_seq_tile(S: int, row_bytes: int) -> int:
    """Bytes-driven sequence tile.

    One x block targets ~4 MiB (big enough to amortize the ~0.35 us per-step
    pipeline overhead, small enough that double-buffered in/out/pe blocks stay
    well inside v7x's 64 MiB VMEM).  Only a >=2-step floor is applied so the
    'parallel' grid axis can feed both v7x TensorCores.  TS is a multiple of 8
    (or == S) to satisfy the (8, 128) sublane rule.
    """
    if S <= 16:
        return S
    block_budget = 4 << 20                             # ~4 MiB of x per block
    ts_cap = max(8, block_budget // max(1, row_bytes))
    ts_half = pl.cdiv(S, 2)                            # keep >= 2 grid steps
    ts = min(ts_cap, ts_half, S)
    ts = (ts // 8) * 8
    return max(ts, 8)


def positional_encoding_forward(x: jnp.ndarray, pe_full: jnp.ndarray) -> jnp.ndarray:
    """x: (S, B, D); pe_full: (max_len, D) fp32 buffer.  Returns x + pe[:S]."""
    S, B, D = x.shape
    LD = B * D
    x2d = x.reshape(S, LD)                             # free metadata reshape

    itemsize = jnp.dtype(x.dtype).itemsize
    TS = _choose_seq_tile(S, LD * itemsize)
    grid = (pl.cdiv(S, TS),)

    # Layout-aware VMEM budget: pad block dims to the dtype sublane tile / 128
    # lanes before counting bytes (2 in + 2 out x buffers, 2 pe buffers).
    sub = max(1, 32 // itemsize)                       # 8 for f32, 16 for bf16
    x_blk_bytes = (pl.cdiv(TS, sub) * sub) * (pl.cdiv(LD, 128) * 128) * itemsize
    pe_blk_bytes = (pl.cdiv(TS, 8) * 8) * (pl.cdiv(D, 128) * 128) * 4
    vmem_limit = int(min(max(4 * x_blk_bytes + 2 * pe_blk_bytes + (2 << 20),
                             4 << 20),
                         40 << 20))

    out2d = pl.pallas_call(
        partial(_pe_add_kernel, batch=B),
        out_shape=jax.ShapeDtypeStruct((S, LD), x.dtype),
        grid_spec=pltpu.PrefetchScalarGridSpec(
            num_scalar_prefetch=0,
            grid=grid,
            in_specs=[
                pl.BlockSpec((TS, LD), lambda i: (i, 0)),
                pl.BlockSpec((TS, D), lambda i: (i, 0)),   # only first ~S rows DMA'd
            ],
            out_specs=pl.BlockSpec((TS, LD), lambda i: (i, 0)),
        ),
        # Write the result back into x's buffer when the caller donates it.
        input_output_aliases={0: 0},
        compiler_params=pltpu.CompilerParams(
            dimension_semantics=("parallel",),
            vmem_limit_bytes=vmem_limit,
        ),
    )(x2d, pe_full)

    return out2d.reshape(S, B, D)


if __name__ == "__main__":
    # Small shapes implied by the forward: x is (seq, batch, d_model).
    # d_model = 128 keeps the flattened B*D last dim lane-dense; seq = 64 with
    # TS = 32 gives a 2-step "parallel" grid (one block per v7x TensorCore).
    S, B, D = 64, 2, 128
    MAX_LEN = 256  # semantics identical to max_len=5000; only rows [:S] are read

    key = jax.random.PRNGKey(0)
    x = jax.random.normal(key, (S, B, D), dtype=jnp.float32)

    pe_full = _build_pe(D, MAX_LEN)

    # Reference (pure JAX, mirrors PyTorch broadcasting of (S,1,D) + (S,B,D)),
    # computed before the kernel call so output aliasing can never interfere.
    ref = jax.block_until_ready(x + pe_full[:S][:, None, :])

    fwd = jax.jit(positional_encoding_forward)
    out = jax.block_until_ready(fwd(x, pe_full))

    assert out.shape == (S, B, D)
    assert out.dtype == x.dtype
    assert jnp.allclose(out, ref, atol=1e-6, rtol=1e-6)

    print("KERNEL_OK")
</pallas_src>

<mosaic_0001>
module attributes {stable_mosaic.version = 11 : i64} {
  func.func @_pe_add_kernel(%arg0: i32, %arg1: memref<32x256xf32, #tpu.memory_space<vmem>>, %arg2: memref<32x128xf32, #tpu.memory_space<vmem>>, %arg3: memref<32x256xf32, #tpu.memory_space<vmem>>) attributes {dimension_semantics = [#tpu.dimension_semantics<parallel>], iteration_bounds = array<i64: 2>, scalar_prefetch = 0 : i64, scratch_operands = 0 : i64, tpu.core_type = #tpu.core_type<tc>, window_params = [{transform_indices = @transform_0, window_bounds = array<i64: 32, 256>}, {transform_indices = @transform_1, window_bounds = array<i64: 32, 128>}, {transform_indices = @transform_2, window_bounds = array<i64: 32, 256>}]} {
    %c0 = arith.constant 0 : index
    %c0_0 = arith.constant 0 : index
    %0 = vector.load %arg1[%c0, %c0_0] : memref<32x256xf32, #tpu.memory_space<vmem>>, vector<32x256xf32>
    %c0_1 = arith.constant 0 : index
    %c0_2 = arith.constant 0 : index
    %1 = vector.load %arg2[%c0_1, %c0_2] : memref<32x128xf32, #tpu.memory_space<vmem>>, vector<32x128xf32>
    %2 = tpu.concatenate %1, %1 in 1 : vector<32x128xf32>, vector<32x128xf32> -> vector<32x256xf32>
    %3 = arith.addf %0, %2 : vector<32x256xf32>
    %c0_3 = arith.constant 0 : index
    %c0_4 = arith.constant 0 : index
    %4 = vector.load %arg3[%c0_3, %c0_4] : memref<32x256xf32, #tpu.memory_space<vmem>>, vector<32x256xf32>
    tpu.vector_store %arg3[%c0_3, %c0_4], %3 {strides = array<i32>} : memref<32x256xf32, #tpu.memory_space<vmem>>, vector<32x256xf32>,
    return
  }
  func.func @transform_0(%arg0: i32) -> (i32, i32) {
    %c0_i32 = arith.constant 0 : i32
    %c0_i32_0 = arith.constant 0 : i32
    return %arg0, %c0_i32 : i32, i32
  }
  func.func @transform_1(%arg0: i32) -> (i32, i32) {
    %c0_i32 = arith.constant 0 : i32
    %c0_i32_0 = arith.constant 0 : i32
    return %arg0, %c0_i32 : i32, i32
  }
  func.func @transform_2(%arg0: i32) -> (i32, i32) {
    %c0_i32 = arith.constant 0 : i32
    %c0_i32_0 = arith.constant 0 : i32
    return %arg0, %c0_i32 : i32, i32
  }
}

</mosaic_0001>

<bundles_post_ra>
// kernel: positional_encoding_forward.1
= control target key start
LH: loop header
LB: loop body
LE: loop exit
PB: predicated region body
PF: predicated region fallthrough
CT: control target
= control target key end

     0   :  { %s320_s9 = smov 0   ;;  %s340_s0 = inlined_call_operand.vmem [shape: f32[64,256], index: 0, kind: input, shape index: {}, may-alias: {0,2}]   ;;  %s341_s1 = inlined_call_operand.vmem [shape: f32[256,128], index: 1, kind: input, shape index: {}]   ;;  %s342_s2 = inlined_call_operand.vmem [shape: f32[64,256], index: 2, kind: output, shape index: {}, may-alias: {0,2}]  }
   0x1 LB: > { %s272_s10 = sadd.s32 4294967295, %s303_s9   ;;  %p276_p0 = scmp.ge.s32.totalorder %s303_s9, 1  ;;  %s303_s9 = sphi %s320_s9, %s12_s9  }
   0x2   : > { %p125_p1 = scmp.lt.s32.totalorder %s303_s9, 3 }
   0x4   : > { %p126_p2 = pnand %p276_p0, %p125_p1 }
   0x5   : > { %s277_s11 = sshll.u32 (!%p126_p2), %s272_s10, 2 }
   0x6   : > { %129 = sbr.rel (%p126_p2) target bundleno = 24 (0x18), region = 28  ;;  %p155_p3 = scmp.lt.s32.totalorder (!%p126_p2), %s277_s11, 7 }
   0x7   : > { %p162_p4 = scmp.lt.s32.totalorder (!%p126_p2), %s277_s11, 31 }
   0xb   : > { %s156_s12 = scalar_select %p155_p3, %s277_s11, 7 }
   0xc   : > { %s344_s11 = smov (!%p162_p4, %s277_s11), 31 }
   0xd   : > { %s287_s13 = sshll.u32 %s156_s12, 4  ;;  %s281_s17 = sshll.u32 %s344_s11, 3 }
   0xe   : > { %s159_s16 = scalar_lea.vmem %s340_s0, %s287_s13  ;;  %s165_s20 = scalar_lea.vmem %s341_s1, %s281_s17 }
   0xf   : > { %v174_v0 = vld [vmem:[%s159_s16] sm:$0xff]  ;;  %v176_v1 = vld [vmem:[%s159_s16 + $0x10] sm:$0xff]  ;;  %s172_s23 = scalar_lea.vmem %s342_s2, %s287_s13  ;;  %v183_v5 = vld [vmem:[%s165_s20 + $0x8] sm:$0xff] }
  0x10   : > { %v178_v2 = vld [vmem:[%s159_s16 + $0x20] sm:$0xff]  ;;  %v180_v3 = vld [vmem:[%s159_s16 + $0x30] sm:$0xff]  ;;  %v188_v7 = vadd.f32 %v183_v5, %v176_v1  ;;  %v175_v8 = vld [vmem:[%s159_s16 + $0x8] sm:$0xff] }
  0x11   : > { %v182_v4 = vld [vmem:[%s165_s20] sm:$0xff]  ;;  %v177_v9 = vld [vmem:[%s159_s16 + $0x18] sm:$0xff]  ;;  %v179_v10 = vld [vmem:[%s159_s16 + $0x28] sm:$0xff] }
  0x12   : > { %v186_v6 = vadd.f32 %v182_v4, %v174_v0  ;;  %v181_v11 = vld [vmem:[%s159_s16 + $0x38] sm:$0xff]  ;;  %v187_v12 = vadd.f32 %v182_v4, %v175_v8  ;;  %v189_v13 = vadd.f32 %v183_v5, %v177_v9  ;;  %v184_v14 = vld [vmem:[%s165_s20 + $0x10] sm:$0xff] }
  0x13   : > { %v185_v15 = vld [vmem:[%s165_s20 + $0x18] sm:$0xff]  ;;  %v190_v16 = vadd.f32 %v184_v14, %v178_v2  ;;  %v191_v17 = vadd.f32 %v184_v14, %v179_v10  ;;  %196 = vst [vmem:[%s172_s23 + $0x10] sm:$0xff] %v188_v7 }
  0x14   : > { %194 = vst [vmem:[%s172_s23] sm:$0xff] %v186_v6  ;;  %v192_v18 = vadd.f32 %v185_v15, %v180_v3  ;;  %v193_v19 = vadd.f32 %v185_v15, %v181_v11  ;;  %195 = vst [vmem:[%s172_s23 + $0x8] sm:$0xff] %v187_v12 }
  0x15   : > { %197 = vst [vmem:[%s172_s23 + $0x18] sm:$0xff] %v189_v13  ;;  %198 = vst [vmem:[%s172_s23 + $0x20] sm:$0xff] %v190_v16 }
  0x16   : > { %199 = vst [vmem:[%s172_s23 + $0x28] sm:$0xff] %v191_v17  ;;  %200 = vst [vmem:[%s172_s23 + $0x30] sm:$0xff] %v192_v18 }
  0x17   : > { %201 = vst [vmem:[%s172_s23 + $0x38] sm:$0xff] %v193_v19 }
  0x18 PF: > { %s12_s9 = sadd.s32 1, %s303_s9  }
  0x19   : > { %p9_p5 = scmp.ge.s32.totalorder %s12_s9, 4  }
  0x1b   :  { %11 = sbr.rel (!%p9_p5) target bundleno = 1 (0x1), region = 61 }

</bundles_post_ra>
